<compile_context>
chip_gen: v7x
topology: tpu7x:2x2x1
jax: 0.10.0
libtpu: 0.0.40
codegen_flags: <defaults>
</compile_context>

<pallas_src>
import functools

import jax
import jax.numpy as jnp
from jax.experimental import pallas as pl
from jax.experimental.pallas import tpu as pltpu


def _layer_att2_kernel(x_ref, wqkv_ref, bqkv_ref, o_ref, *, d_out,
                       approx_recip, mxu_dtype):
    b_tile, l_seq, d_in = x_ref.shape

    # Fused QKV projection: one MXU pass over (BT*L, Din) @ (Din, 3*Dout).
    # The 1/sqrt(Dout) softmax scale is pre-folded into the Q columns of wqkv
    # (wrapper side), so there is no per-element multiply over the LxL scores.
    x2 = x_ref[...].reshape(b_tile * l_seq, d_in)
    qkv = jnp.dot(x2, wqkv_ref[...], preferred_element_type=jnp.float32)
    qkv = (qkv + bqkv_ref[...]).reshape(b_tile, l_seq, 3 * d_out)
    q = qkv[:, :, :d_out]
    k = qkv[:, :, d_out:2 * d_out]
    v = qkv[:, :, 2 * d_out:]

    if mxu_dtype is not None:  # bf16 MXU operands (v6e/v7x); f32 accumulation.
        q, k = q.astype(mxu_dtype), k.astype(mxu_dtype)

    # att = softmax(Q K^T, axis=-1), batched over the batch tile.
    scores = jnp.einsum("bld,bmd->blm", q, k,
                        preferred_element_type=jnp.float32)
    scores = scores - jnp.max(scores, axis=-1, keepdims=True)
    p = jnp.exp(scores)
    denom = jnp.sum(p, axis=-1, keepdims=True)
    p = p * pl.reciprocal(denom, approx=approx_recip)   # EUP vrcp when approx

    # mean_l(att @ V) == (mean_l att) @ V  (mean is linear):
    # (BT,1,L) @ (BT,L,Dout) -> (BT,1,Dout); output produced in final shape.
    p_mean = jnp.mean(p, axis=1, keepdims=True)          # (BT, 1, L)
    if mxu_dtype is not None:
        p_mean, v = p_mean.astype(mxu_dtype), v.astype(mxu_dtype)
    o = jnp.einsum("blm,bmd->bld", p_mean, v,
                   preferred_element_type=jnp.float32)   # (BT, 1, Dout)
    o_ref[...] = o[:, 0, :].astype(o_ref.dtype)


def _select_tiling(B, L, Din, Dout):
    """MXU/VMEM-driven batch tile: multiple of 8, divides the padded batch."""
    B_pad = ((B + 7) // 8) * 8            # sublane-dense output blocks
    units = B_pad // 8                    # candidate tiles are 8*d, d | units

    # MXU fill target: M = batch_tile*L rows per fused-QKV matmul pass
    # (~256 fills a v6e/v7x 256x256 MXU; >=128 is already fine for v5e).
    target_rows = 256
    bt_mxu = max(8, ((-(-target_rows // L)) + 7) // 8 * 8)

    # VMEM budget: ~half of physical (v7x: 64 MiB/TC -> ~32 MiB budget),
    # capped at 48 MiB on the 128 MiB v5e/v6e parts.
    try:
        vmem_phys = pltpu.get_tpu_info().vmem_capacity_bytes
    except Exception:
        vmem_phys = 64 << 20              # conservative fallback (v7x per-TC)
    vmem_budget = min(vmem_phys // 2, 48 << 20)

    fixed = (Din * 3 * Dout + 3 * Dout) * 4          # weights (single-buffered)
    # Per batch-row f32 working set: 2x x-block (double buffered) + qkv
    # intermediate + scores/p (LxL) + output temporaries.
    per_row = (2 * L * Din + L * 3 * Dout + 2 * L * L + 2 * Dout) * 4
    bt_vmem = max(8, ((vmem_budget - fixed) // max(per_row, 1)) // 8 * 8)
    # TODO(synk): for very long L the (BT, L, L) scores tensor can exceed the
    # budget even at batch_tile=8; that case wants a flash-style online softmax
    # over key tiles rather than a smaller batch tile.

    bt_cap = max(8, min(bt_mxu, bt_vmem, B_pad))
    # Largest multiple of 8 that divides B_pad and fits the cap: every grid
    # step is identical (no ragged last block) and wrapper padding is at most
    # the 7-row sublane alignment (only when B % 8 != 0).
    batch_tile = 8
    for d in range(1, units + 1):
        if units % d == 0 and 8 * d <= bt_cap:
            batch_tile = 8 * d

    working = fixed + batch_tile * per_row
    vmem_limit = int(min(vmem_phys * 3 // 4, max(32 << 20, 2 * working)))
    return batch_tile, B_pad, vmem_limit


def layer_att2(x, wq, bq, wk, bk, wv, bv, *, approx_recip=False, mxu_dtype=None):
    """Pallas implementation of LayerAtt2.forward.

    x : (B, L, D_in) or (B, D_in)
    wq/wk/wv : (D_in, D_out)   (transposed nn.Linear weight)
    bq/bk/bv : (D_out,)
    returns  : (B, D_out) float32
    """
    if x.ndim == 2:                        # matches `x = x.unsqueeze(1)`
        x = x[:, None, :]
    B, L, Din = x.shape
    Dout = wq.shape[1]
    norm = 1.0 / (Dout ** 0.5)

    # Fuse the three projections into one weight / bias; fold the softmax
    # scale into Q's columns (exact by linearity of the projection).
    wqkv = jnp.concatenate([wq * norm, wk, wv], axis=1)            # (Din, 3*Dout)
    bqkv = jnp.concatenate([bq * norm, bk, bv], axis=0).reshape(1, 3 * Dout)
    bqkv = bqkv.astype(jnp.float32)

    if mxu_dtype is not None:              # halve x DMA bytes, bf16 MXU inputs
        x = x.astype(mxu_dtype)
        wqkv = wqkv.astype(mxu_dtype)

    batch_tile, B_pad, vmem_limit = _select_tiling(B, L, Din, Dout)
    num_steps = B_pad // batch_tile
    if B_pad != B:
        # <= 7 rows of sublane-alignment padding (only when B % 8 != 0);
        # padded rows are computed on zeros and sliced off below.
        x = jnp.pad(x, ((0, B_pad - B), (0, 0), (0, 0)))

    kernel = functools.partial(_layer_att2_kernel, d_out=Dout,
                               approx_recip=approx_recip, mxu_dtype=mxu_dtype)

    cost = pl.CostEstimate(
        flops=(2 * B_pad * L * Din * 3 * Dout      # fused QKV projection
               + 2 * B_pad * L * L * Dout          # Q K^T
               + 2 * B_pad * L * Dout),            # (mean att) @ V
        transcendentals=B_pad * L * L,             # exp
        bytes_accessed=(x.size * x.dtype.itemsize
                        + wqkv.size * wqkv.dtype.itemsize
                        + bqkv.size * 4
                        + B_pad * Dout * 4))

    out = pl.pallas_call(
        kernel,
        out_shape=jax.ShapeDtypeStruct((B_pad, Dout), jnp.float32),
        grid=(num_steps,),
        in_specs=[
            pl.BlockSpec((batch_tile, L, Din), lambda s: (s, 0, 0)),
            # Grid-invariant weights/bias: single-buffered (no pointless
            # double-buffer of constant-index_map operands).
            pl.BlockSpec((Din, 3 * Dout), lambda s: (0, 0),
                         pipeline_mode=pl.Buffered(1)),
            pl.BlockSpec((1, 3 * Dout), lambda s: (0, 0),
                         pipeline_mode=pl.Buffered(1)),
        ],
        out_specs=pl.BlockSpec((batch_tile, Dout), lambda s: (s, 0)),
        compiler_params=pltpu.CompilerParams(
            dimension_semantics=("parallel",),
            vmem_limit_bytes=vmem_limit),
        cost_estimate=cost,
    )(x, wqkv, bqkv)

    return out[:B]


def layer_att2_ref(x, wq, bq, wk, bk, wv, bv):
    """Pure-JAX reference mirroring the PyTorch forward."""
    if x.ndim == 2:
        x = x[:, None, :]
    Dout = wq.shape[1]
    norm = 1.0 / (Dout ** 0.5)
    Q = x @ wq + bq
    K = x @ wk + bk
    V = x @ wv + bv
    att = jnp.einsum("bld,bmd->blm", Q, K) * norm
    att = jax.nn.softmax(att, axis=-1)
    out = jnp.einsum("blm,bmd->bld", att, V)
    return out.mean(axis=1)


if __name__ == "__main__":
    B, L, Din, Dout = 2, 8, 32, 32

    key = jax.random.PRNGKey(0)
    kx, kwq, kbq, kwk, kbk, kwv, kbv = jax.random.split(key, 7)

    # Deterministic parameter init (PyTorch-Linear-style uniform bound).
    bound = 1.0 / (Din ** 0.5)
    wq = jax.random.uniform(kwq, (Din, Dout), jnp.float32, -bound, bound)
    bq = jax.random.uniform(kbq, (Dout,), jnp.float32, -bound, bound)
    wk = jax.random.uniform(kwk, (Din, Dout), jnp.float32, -bound, bound)
    bk = jax.random.uniform(kbk, (Dout,), jnp.float32, -bound, bound)
    wv = jax.random.uniform(kwv, (Din, Dout), jnp.float32, -bound, bound)
    bv = jax.random.uniform(kbv, (Dout,), jnp.float32, -bound, bound)

    x = jax.random.normal(kx, (B, L, Din), jnp.float32)
    ref = layer_att2_ref(x, wq, bq, wk, bk, wv, bv)

    # Default path: exact reciprocal, f32 MXU -- tight tolerance.
    out = jax.block_until_ready(layer_att2(x, wq, bq, wk, bk, wv, bv))
    assert out.shape == (B, Dout), out.shape
    assert jnp.allclose(out, ref, atol=1e-5, rtol=1e-5), "exact path mismatch"

    # Fast path (approx reciprocal on the EUP) -- slightly loosened tolerance.
    out_approx = jax.block_until_ready(
        layer_att2(x, wq, bq, wk, bk, wv, bv, approx_recip=True))
    assert jnp.allclose(out_approx, ref, atol=5e-3, rtol=5e-3), "approx path mismatch"

    # bf16 MXU-operand path (recommended on v6e/v7x) -- loose tolerance.
    out_bf16 = jax.block_until_ready(
        layer_att2(x, wq, bq, wk, bk, wv, bv, mxu_dtype=jnp.bfloat16))
    assert jnp.allclose(out_bf16, ref, atol=5e-2, rtol=5e-2), "bf16 path mismatch"

    # 2-D input path (matches the PyTorch unsqueeze(1) branch).
    x2d = x[:, 0, :]
    out2d = jax.block_until_ready(layer_att2(x2d, wq, bq, wk, bk, wv, bv))
    ref2d = layer_att2_ref(x2d, wq, bq, wk, bk, wv, bv)
    assert out2d.shape == (B, Dout)
    assert jnp.allclose(out2d, ref2d, atol=1e-5, rtol=1e-5), "2-D path mismatch"

    print("KERNEL_OK")
</pallas_src>

<mosaic_0001>
module attributes {stable_mosaic.version = 11 : i64} {
  func.func @_layer_att2_kernel(%arg0: i32, %arg1: memref<8x8x32xf32, #tpu.memory_space<vmem>>, %arg2: memref<32x96xf32, #tpu.memory_space<vmem>>, %arg3: memref<1x96xf32, #tpu.memory_space<vmem>>, %arg4: memref<8x32xf32, #tpu.memory_space<vmem>>) attributes {dimension_semantics = [#tpu.dimension_semantics<parallel>], iteration_bounds = array<i64: 1>, scalar_prefetch = 0 : i64, scratch_operands = 0 : i64, tpu.core_type = #tpu.core_type<tc>, window_params = [{transform_indices = @transform_0, window_bounds = array<i64: 8, 8, 32>}, {pipeline_mode = #tpu.pipeline_mode<synchronous>, transform_indices = @transform_1, window_bounds = array<i64: 32, 96>}, {pipeline_mode = #tpu.pipeline_mode<synchronous>, transform_indices = @transform_2, window_bounds = array<i64: 1, 96>}, {transform_indices = @transform_3, window_bounds = array<i64: 8, 32>}]} {
    %c0 = arith.constant 0 : index
    %c0_0 = arith.constant 0 : index
    %c0_1 = arith.constant 0 : index
    %0 = vector.load %arg1[%c0, %c0_0, %c0_1] : memref<8x8x32xf32, #tpu.memory_space<vmem>>, vector<8x8x32xf32>
    %1 = vector.shape_cast %0 : vector<8x8x32xf32> to vector<64x32xf32>
    %c0_2 = arith.constant 0 : index
    %c0_3 = arith.constant 0 : index
    %2 = vector.load %arg2[%c0_2, %c0_3] : memref<32x96xf32, #tpu.memory_space<vmem>>, vector<32x96xf32>
    %cst = arith.constant dense<0.000000e+00> : vector<64x96xf32>
    %3 = tpu.matmul %1, %2, %cst {dimension_numbers = #tpu.dot_dimension_numbers<[1], [0], [0], [1], [0, 0, 1, 1], [], []>} : vector<64x32xf32>, vector<32x96xf32>, vector<64x96xf32> -> vector<64x96xf32>
    %c0_4 = arith.constant 0 : index
    %c0_5 = arith.constant 0 : index
    %4 = vector.load %arg3[%c0_4, %c0_5] : memref<1x96xf32, #tpu.memory_space<vmem>>, vector<1x96xf32>
    %5 = vector.broadcast %4 : vector<1x96xf32> to vector<64x96xf32>
    %6 = arith.addf %3, %5 : vector<64x96xf32>
    %7 = vector.shape_cast %6 : vector<64x96xf32> to vector<8x8x96xf32>
    %8 = vector.extract_strided_slice %7 {offsets = [0, 0, 0], sizes = [8, 8, 32], strides = [1, 1, 1]} : vector<8x8x96xf32> to vector<8x8x32xf32>
    %9 = vector.extract_strided_slice %7 {offsets = [0, 0, 32], sizes = [8, 8, 32], strides = [1, 1, 1]} : vector<8x8x96xf32> to vector<8x8x32xf32>
    %10 = vector.extract_strided_slice %7 {offsets = [0, 0, 64], sizes = [8, 8, 32], strides = [1, 1, 1]} : vector<8x8x96xf32> to vector<8x8x32xf32>
    "tpu.trace_start"() <{level = 10 : i32, message = "bld,bmd->blm"}> : () -> ()
    %cst_6 = arith.constant dense<0.000000e+00> : vector<8x8x8xf32>
    %11 = tpu.matmul %8, %9, %cst_6 {dimension_numbers = #tpu.dot_dimension_numbers<[2], [2], [1], [1], [0, 0, 0, 1, 1, 1], [0], [0]>} : vector<8x8x32xf32>, vector<8x8x32xf32>, vector<8x8x8xf32> -> vector<8x8x8xf32>
    "tpu.trace_stop"() : () -> ()
    %cst_7 = arith.constant dense<0xFF800000> : vector<8x8xf32>
    %12 = vector.multi_reduction <maximumf>, %11, %cst_7 [2] : vector<8x8x8xf32> to vector<8x8xf32>
    %13 = vector.shape_cast %12 : vector<8x8xf32> to vector<8x8x1xf32>
    %14 = vector.broadcast %13 : vector<8x8x1xf32> to vector<8x8x8xf32>
    %15 = arith.subf %11, %14 : vector<8x8x8xf32>
    %16 = math.exp %15 : vector<8x8x8xf32>
    %cst_8 = arith.constant dense<0.000000e+00> : vector<8x8xf32>
    %17 = vector.multi_reduction <add>, %16, %cst_8 [2] : vector<8x8x8xf32> to vector<8x8xf32>
    %18 = vector.shape_cast %17 : vector<8x8xf32> to vector<8x8x1xf32>
    %19 = tpu.reciprocal %18 : vector<8x8x1xf32> -> vector<8x8x1xf32>
    %20 = vector.broadcast %19 : vector<8x8x1xf32> to vector<8x8x8xf32>
    %21 = arith.mulf %16, %20 : vector<8x8x8xf32>
    %cst_9 = arith.constant dense<0.000000e+00> : vector<8x8xf32>
    %22 = vector.multi_reduction <add>, %21, %cst_9 [1] : vector<8x8x8xf32> to vector<8x8xf32>
    %23 = vector.shape_cast %22 : vector<8x8xf32> to vector<8x1x8xf32>
    %cst_10 = arith.constant 8.000000e+00 : f32
    %24 = vector.broadcast %cst_10 : f32 to vector<8x1x8xf32>
    %25 = arith.divf %23, %24 : vector<8x1x8xf32>
    "tpu.trace_start"() <{level = 10 : i32, message = "blm,bmd->bld"}> : () -> ()
    %cst_11 = arith.constant dense<0.000000e+00> : vector<8x1x32xf32>
    %26 = tpu.matmul %25, %10, %cst_11 {dimension_numbers = #tpu.dot_dimension_numbers<[2], [1], [1], [2], [0, 0, 0, 1, 1, 2], [0], [0]>} : vector<8x1x8xf32>, vector<8x8x32xf32>, vector<8x1x32xf32> -> vector<8x1x32xf32>
    "tpu.trace_stop"() : () -> ()
    %27 = vector.shape_cast %26 : vector<8x1x32xf32> to vector<8x32xf32>
    %c0_12 = arith.constant 0 : index
    %c0_13 = arith.constant 0 : index
    %28 = vector.load %arg4[%c0_12, %c0_13] : memref<8x32xf32, #tpu.memory_space<vmem>>, vector<8x32xf32>
    tpu.vector_store %arg4[%c0_12, %c0_13], %27 {strides = array<i32>} : memref<8x32xf32, #tpu.memory_space<vmem>>, vector<8x32xf32>,
    return
  }
  func.func @transform_0(%arg0: i32) -> (i32, i32, i32) {
    %c0_i32 = arith.constant 0 : i32
    %c0_i32_0 = arith.constant 0 : i32
    %c0_i32_1 = arith.constant 0 : i32
    return %arg0, %c0_i32, %c0_i32_0 : i32, i32, i32
  }
  func.func @transform_1(%arg0: i32) -> (i32, i32) {
    %c0_i32 = arith.constant 0 : i32
    %c0_i32_0 = arith.constant 0 : i32
    %c0_i32_1 = arith.constant 0 : i32
    return %c0_i32, %c0_i32_0 : i32, i32
  }
  func.func @transform_2(%arg0: i32) -> (i32, i32) {
    %c0_i32 = arith.constant 0 : i32
    %c0_i32_0 = arith.constant 0 : i32
    %c0_i32_1 = arith.constant 0 : i32
    return %c0_i32, %c0_i32_0 : i32, i32
  }
  func.func @transform_3(%arg0: i32) -> (i32, i32) {
    %c0_i32 = arith.constant 0 : i32
    %c0_i32_0 = arith.constant 0 : i32
    return %arg0, %c0_i32 : i32, i32
  }
}

</mosaic_0001>

<bundles_post_ra>
// kernel: tpu_custom_call.1
= control target key start
LH: loop header
LB: loop body
LE: loop exit
PB: predicated region body
PF: predicated region fallthrough
CT: control target
= control target key end

     0   :  { %8 = vsyncpa [#allocation3], 0  ;;  %s2152_s0 = inlined_call_operand.hbm [shape: f32[8,8,32], index: 0, kind: input, shape index: {}]   ;;  %s2153_s1 = inlined_call_operand.hbm [shape: f32[32,96], index: 1, kind: input, shape index: {}]   ;;  %s2154_s2 = inlined_call_operand.vmem [shape: f32[1,96], index: 2, kind: input, shape index: {}]   ;;  %s2155_s3 = inlined_call_operand.hbm [shape: f32[8,32], index: 3, kind: output, shape index: {}]  }
   0x1   :  { %9 = vsyncpa [#allocation6], 0 }
   0x2   :  { %10 = vsyncpa [#allocation4], 0  ;;  %s1915_s12 = smov [#allocation2]   ;;  %s1843_s16 = scalar_lea.hbm %s2152_s0, 1024 }
   0x3   :  { %s16_s13 = sshll.u32 %s1915_s12, 4  ;;  %p1844_p0 = scmp.ne.s32.totalorder %s2152_s0, %s1843_s16  ;;  %s17_s13 = int_to_ptr.vmem [resolvable:$true] %s16_s13 }
   0x4   :  { %p1847_p1 = scmp.lt.u32.totalorder %s1843_s16, %s2152_s0 }
   0x6   :  { %p1849_p2 = pnand %p1847_p1, %p1844_p0 }
   0x8   :  { %1852 = shalt.err (!%p1849_p2)
}
   0x9   :  { %s1853_s21 = scalar_lea.vmem %s17_s13, 1024  ;;  %p1858_p4 = scmp.lt.s32.totalorder %s17_s13, %s17_s13 }
   0xa   :  { %p1854_p3 = scmp.ne.s32.totalorder %s17_s13, %s1853_s21  ;;  %p1859_p5 = scmp.lt.s32.totalorder %s1853_s21, %s1853_s21 }
   0xc   :  { %p1860_p6 = por %p1859_p5, %p1858_p4 }
   0xe   :  { %p1861_p7 = pnand %p1860_p6, %p1854_p3 }
  0x10   :  { %1864 = shalt.err (!%p1861_p7)
}
  0x11   :  { %s1916_s22 = smov 128   ;;  %s1917_s23 = smov 8  }
  0x12   :  { %22 = dma.hbm_to_vmem [thread:$0]  %s2152_s0, 1024, %s17_s13, [#allocation3], %s1916_s22, %s1916_s22, %s1917_s23  }
  0x13   :  { %s1918_s26 = smov [#allocation5]   ;;  %s1865_s30 = scalar_lea.hbm %s2153_s1, 512 }
  0x14   :  { %s28_s27 = sshll.u32 %s1918_s26, 4  ;;  %p1866_p8 = scmp.ne.s32.totalorder %s2153_s1, %s1865_s30  ;;  %s29_s27 = int_to_ptr.vmem [resolvable:$true] %s28_s27 }
  0x15   :  { %p1869_p9 = scmp.lt.u32.totalorder %s1865_s30, %s2153_s1 }
  0x17   :  { %p1871_p10 = pnand %p1869_p9, %p1866_p8 }
  0x19   :  { %1874 = shalt.err (!%p1871_p10)
}
  0x1a   :  { %s1875_s8 = scalar_lea.vmem %s29_s27, 512  ;;  %p1880_p12 = scmp.lt.s32.totalorder %s29_s27, %s29_s27 }
  0x1b   :  { %p1876_p11 = scmp.ne.s32.totalorder %s29_s27, %s1875_s8  ;;  %p1881_p13 = scmp.lt.s32.totalorder %s1875_s8, %s1875_s8 }
  0x1d   :  { %p1882_p0 = por %p1881_p13, %p1880_p12 }
  0x1f   :  { %p1883_p1 = pnand %p1882_p0, %p1876_p11 }
  0x21   :  { %1886 = shalt.err (!%p1883_p1)
}
  0x22   :  { %34 = dma.hbm_to_vmem [thread:$0]  %s2153_s1, 512, %s29_s27, [#allocation6], %s1916_s22, %s1916_s22, %s1917_s23  }
  0x23   :  { %1909 = dma.done.wait [#allocation3], 1024  }
  0x24   :  { %1910 = vsyncadd [#allocation3], 4294966272 }
  0x25   :  { %1911 = dma.done.wait [#allocation6], 512  }
  0x26   :  { %1912 = vsyncadd [#allocation6], 4294966784  ;;  %vm62_vm0 = vcmask 261120   ;;  %v51_v0 = vld [vmem:[#allocation5] sm:$0xff]  ;;  %v52_v1 = vld [vmem:[#allocation5 + $0x8] sm:$0xff]  ;;  %v1919_v14 = vmov 0.0  }
  0x27   :  { %v53_v2 = vld [vmem:[#allocation5 + $0x10] sm:$0xff]  ;;  %v1794_v3 = vpack.c.bf16 %v52_v1, %v51_v0  ;;  %v54_v4 = vld [vmem:[#allocation5 + $0x18] sm:$0xff]  ;;  %v43_v5 = vld [vmem:[#allocation2] sm:$0xff]  ;;  %1714 = vmatprep.subr.mxu1 %v1919_v14  ;;  %vm1920_vm1 = vmmov 0   ;;  %s1921_s11 = smov 96   ;;  %vm808_vm2 = vcmask 64512  }
  0x28   :  { %v1798_v6 = vpack.c.bf16 %v54_v4, %v53_v2  ;;  %1702 = vmatprep.mubr.msk.f32.mxu0 %vm62_vm0, %v43_v5  ;;  %v44_v7 = vld [vmem:[#allocation2 + $0x8] sm:$0xff]  ;;  %v45_v8 = vld [vmem:[#allocation2 + $0x10] sm:$0xff]  ;;  %v46_v9 = vld [vmem:[#allocation2 + $0x18] sm:$0xff]  ;;  %1716 = vmatprep.mubr.msk.f32.mxu1 %vm1920_vm1, %v1919_v14  ;;  %vm1579_vm3 = vcmask 1041409   ;;  %vm1582_vm4 = vcmask 1042434   ;;  %vm1585_vm5 = vcmask 1043459  }
  0x29   :  { %1795 = vmatprep.subr.bf16.mxu0 %v1794_v3  ;;  %v47_v10 = vld [vmem:[#allocation2 + $0x20] sm:$0xff]  ;;  %v48_v11 = vld [vmem:[#allocation2 + $0x28] sm:$0xff]  ;;  %v49_v12 = vld [vmem:[#allocation2 + $0x30] sm:$0xff]  ;;  %vm1588_vm6 = vcmask 1044484   ;;  %vm1591_vm7 = vcmask 1045509   ;;  %vm1594_vm8 = vcmask 1046534  }
  0x2a   :  { %1797 = vmatpush3.bf16.msra.mxu0 %v1794_v3  ;;  %v50_v13 = vld [vmem:[#allocation2 + $0x38] sm:$0xff]  ;;  %v1617_v15 = vld [vmem:[%s2154_s2] ss:$0 sm:$0xff]  ;;  %s1922_s2 = smov 64   ;;  %s1923_s12 = smov [#allocation7]   ;;  %vm1597_vm9 = vcmask 1047559  }
  0x2b   :  { %1799 = vmatprep.subr.bf16.mxu0 %v1798_v6  ;;  %s1607_s13 = sshll.u32 %s1923_s12, 4  ;;  %s1608_s13 = int_to_ptr.vmem [resolvable:$true] %s1607_s13 }
  0x2c   :  { %s1887_s14 = scalar_lea.vmem %s1608_s13, 128  ;;  %p1892_p3 = scmp.lt.s32.totalorder %s1608_s13, %s1608_s13 }
  0x2d   :  { %p1888_p2 = scmp.ne.s32.totalorder %s1608_s13, %s1887_s14  ;;  %p1893_p4 = scmp.lt.s32.totalorder %s1887_s14, %s1887_s14 }
  0x2e   :  { %1801 = vmatpush3.bf16.msra.mxu0 %v1798_v6 }
  0x2f   :  { %1739 = vmatprep.subr.mxu0 %v1919_v14  ;;  %p1894_p5 = por %p1893_p4, %p1892_p3 }
  0x31   :  { %1703 = vmatmul.mubr.msk.f32.vlgmr.msra.gmra.mrb[0].mxu0 %vm62_vm0, %v44_v7  ;;  %p1895_p6 = pnand %p1894_p5, %p1888_p2 }
  0x32   :  { %1705 = vmatprep.mubr.msk.f32.mxu0 %vm62_vm0, %v45_v8 }
  0x35   :  { %1706 = vmatmul.mubr.msk.f32.gmra.mrb[2].mxu0 %vm62_vm0, %v46_v9 }
  0x36   :  { %1708 = vmatprep.mubr.msk.f32.mxu0 %vm62_vm0, %v47_v10 }
  0x39   :  { %1709 = vmatmul.mubr.msk.f32.gmra.mrb[4].mxu0 %vm62_vm0, %v48_v11 }
  0x3a   :  { %1711 = vmatprep.mubr.msk.f32.mxu0 %vm62_vm0, %v49_v12 }
  0x3d   :  { %1712 = vmatmul.mubr.msk.f32.gmra.mrb[6].mxu0 %vm62_vm0, %v50_v13 }
  0x3e   :  { %1741 = vmatprep.mubr.msk.f32.mxu0 %vm1920_vm1, %v1919_v14 }
 0x104   :  { %v1704_v16 = vpop.f32.mrb[0].mxu0 }
 0x105   :  { %v153_v17 = vpop.f32.mrb[1].mxu0  ;;  %v1988_v21 = vadd.f32 %v1704_v16, %v1617_v15 }
 0x106   :  { %v1985_v18 = vadd.f32 %v1617_v15, %v153_v17 }
 0x108   :  { %v1707_v19 = vpop.f32.mrb[2].mxu0  ;;  %193 = vrot.lane.b32.xlu0 %v1985_v18, %s1921_s11 }
 0x109   :  { %v163_v20 = vpop.f32.mrb[3].mxu0  ;;  %v1992_v23 = vadd.f32 %v1707_v19, %v1617_v15 }
 0x10a   :  { %v1990_v22 = vadd.f32 %v1617_v15, %v163_v20 }
 0x10c   :  { %347 = vrot.lane.b32.xlu1 %v1990_v22, %s1921_s11  ;;  %270 = vrot.lane.b32.xlu0 %v1988_v21, %s1921_s11  ;;  %v1710_v24 = vpop.f32.mrb[4].mxu0 }
 0x10d   :  { %v173_v25 = vpop.f32.mrb[5].mxu0  ;;  %v1999_v27 = vadd.f32 %v1710_v24, %v1617_v15 }
 0x10e   :  { %v1996_v26 = vadd.f32 %v1617_v15, %v173_v25 }
 0x110   :  { %424 = vrot.lane.b32.xlu1 %v1992_v23, %s1921_s11  ;;  %v1713_v28 = vpop.f32.mrb[6].mxu0  ;;  %501 = vrot.lane.b32.xlu0 %v1996_v26, %s1921_s11 }
 0x111   :  { %v183_v29 = vpop.f32.mrb[7].mxu0  ;;  %v2005_v31 = vadd.f32 %v1713_v28, %v1617_v15 }
 0x112   :  { %v2002_v30 = vadd.f32 %v1617_v15, %v183_v29 }
 0x114   :  { %578 = vrot.lane.b32.xlu1 %v1999_v27, %s1921_s11  ;;  %655 = vrot.lane.b32.xlu0 %v2002_v30, %s1921_s11 }
 0x118   :  { %732 = vrot.lane.b32.xlu1 %v2005_v31, %s1921_s11 }
 0x17a   :  { %v194_v32 = vpop.permute.xlu0 %193 }
 0x17b   :  { %1715 = vmatpush3.xpose.msk.msra.mxu1 %vm62_vm0, %v194_v32 }
 0x17c   :  { %1719 = vmatprep.subr.mxu1 %v1919_v14 }
 0x17e   :  { %v348_v33 = vpop.permute.xlu1 %347  ;;  %1717 = vmatmul.mubr.msk.f32.vlgmr.msra.gmra.mrb[0].mxu1 %vm62_vm0, %v1985_v18  ;;  %v271_v34 = vpop.permute.xlu0 %270 }
 0x17f   :  { %1720 = vmatpush3.xpose.msk.msra.mxu1 %vm62_vm0, %v271_v34  ;;  %1721 = vmatprep.mubr.msk.f32.mxu1 %vm1920_vm1, %v1919_v14 }
 0x180   :  { %1724 = vmatprep.subr.mxu1 %v1919_v14 }
 0x182   :  { %v425_v35 = vpop.permute.xlu1 %424  ;;  %1722 = vmatmul.mubr.msk.f32.vlgmr.msra.gmra.mrb[2].mxu1 %vm62_vm0, %v1988_v21  ;;  %v502_v37 = vpop.permute.xlu0 %501 }
 0x183   :  { %1725 = vmatpush3.xpose.msk.msra.mxu1 %vm62_vm0, %v348_v33  ;;  %1726 = vmatprep.mubr.msk.f32.mxu1 %vm1920_vm1, %v1919_v14 }
 0x184   :  { %1729 = vmatprep.subr.mxu1 %v1919_v14 }
 0x186   :  { %v579_v36 = vpop.permute.xlu1 %578  ;;  %1727 = vmatmul.mubr.msk.f32.vlgmr.msra.gmra.mrb[4].mxu1 %vm62_vm0, %v1990_v22  ;;  %v656_v39 = vpop.permute.xlu0 %655 }
 0x187   :  { %1730 = vmatpush3.xpose.msk.msra.mxu1 %vm62_vm0, %v425_v35  ;;  %1740 = vmatpush3.xpose.msk.msra.mxu0 %vm62_vm0, %v579_v36 }
 0x188   :  { %1731 = vmatprep.mubr.msk.f32.mxu1 %vm1920_vm1, %v1919_v14  ;;  %1749 = vmatprep.subr.mxu0 %v1919_v14 }
 0x189   :  { %1734 = vmatprep.subr.mxu1 %v1919_v14 }
 0x18a   :  { %1742 = vmatmul.mubr.msk.f32.vlgmr.msra.gmra.mrb[8].mxu0 %vm62_vm0, %v1999_v27  ;;  %v733_v38 = vpop.permute.xlu1 %732  ;;  %1732 = vmatmul.mubr.msk.f32.vlgmr.msra.gmra.mrb[6].mxu1 %vm62_vm0, %v1992_v23 }
 0x18b   :  { %1735 = vmatpush3.xpose.msk.msra.mxu1 %vm62_vm0, %v502_v37  ;;  %1750 = vmatpush3.xpose.msk.msra.mxu0 %vm62_vm0, %v733_v38 }
 0x18c   :  { %1736 = vmatprep.mubr.msk.f32.mxu1 %vm1920_vm1, %v1919_v14  ;;  %1751 = vmatprep.mubr.msk.f32.mxu0 %vm1920_vm1, %v1919_v14 }
 0x18d   :  { %1744 = vmatprep.subr.mxu1 %v1919_v14  ;;  %1759 = vmatprep.subr.mxu0 %v1919_v14 }
 0x18e   :  { %1737 = vmatmul.mubr.msk.f32.vlgmr.msra.gmra.mrb[8].mxu1 %vm62_vm0, %v1996_v26  ;;  %1752 = vmatmul.mubr.msk.f32.vlgmr.msra.gmra.mrb[10].mxu0 %vm62_vm0, %v2005_v31 }
 0x18f   :  { %1745 = vmatpush3.xpose.msk.msra.mxu1 %vm62_vm0, %v656_v39  ;;  %1746 = vmatprep.mubr.msk.f32.mxu1 %vm1920_vm1, %v1919_v14 }
 0x190   :  { %1754 = vmatprep.subr.mxu1 %v1919_v14  ;;  %1761 = vmatprep.mubr.msk.f32.mxu0 %vm1920_vm1, %v1919_v14 }
 0x192   :  { %1747 = vmatmul.mubr.msk.f32.vlgmr.msra.gmra.mrb[10].mxu1 %vm62_vm0, %v2002_v30 }
 0x193   :  { %1756 = vmatprep.mubr.msk.f32.mxu1 %vm1920_vm1, %v1919_v14 }
 0x251   :  { %v265_v40 = vpop.f32.mrb[0].mxu1 }
 0x252   :  { %v1718_v41 = vpop.f32.mrb[1].mxu1  ;;  %v809_v42 = vsel %vm808_vm2, %v265_v40, -inf }
 0x253   :  { %810 = vmax.xlane.f32.xlu0 %v809_v42 }
 0x255   :  { %v342_v43 = vpop.f32.mrb[2].mxu1 }
 0x256   :  { %v1723_v44 = vpop.f32.mrb[3].mxu1  ;;  %v812_v45 = vsel %vm808_vm2, %v342_v43, -inf }
 0x257   :  { %813 = vmax.xlane.f32.xlu1 %v812_v45 }
 0x259   :  { %v419_v46 = vpop.f32.mrb[4].mxu1 }
 0x25a   :  { %v1728_v47 = vpop.f32.mrb[5].mxu1  ;;  %v815_v48 = vsel %vm808_vm2, %v419_v46, -inf }
 0x25b   :  { %816 = vmax.xlane.f32.xlu0 %v815_v48 }
 0x25d   :  { %v496_v49 = vpop.f32.mrb[6].mxu1  ;;  %v650_v50 = vpop.f32.mrb[8].mxu0 }
 0x25e   :  { %v1733_v51 = vpop.f32.mrb[7].mxu1  ;;  %v1743_v52 = vpop.f32.mrb[9].mxu0  ;;  %v818_v53 = vsel %vm808_vm2, %v496_v49, -inf  ;;  %v824_v58 = vsel %vm808_vm2, %v650_v50, -inf }
 0x25f   :  { %819 = vmax.xlane.f32.xlu0 %v818_v53 }
 0x261   :  { %v2061_v54 = vpop.f32.mrb[8].mxu1  ;;  %v804_v55 = vpop.f32.mrb[10].mxu0 }
 0x262   :  { %v1738_v56 = vpop.f32.mrb[9].mxu1  ;;  %v1753_v57 = vpop.f32.mrb[11].mxu0  ;;  %v821_v59 = vsel %vm808_vm2, %v2061_v54, -inf  ;;  %v830_v62 = vsel %vm808_vm2, %v804_v55, -inf }
 0x263   :  { %825 = vmax.xlane.f32.xlu0 %v824_v58  ;;  %822 = vmax.xlane.f32.xlu1 %v821_v59 }
 0x265   :  { %v727_v60 = vpop.f32.mrb[10].mxu1 }
 0x266   :  { %v1748_v61 = vpop.f32.mrb[11].mxu1  ;;  %v827_v63 = vsel %vm808_vm2, %v727_v60, -inf }
 0x267   :  { %831 = vmax.xlane.f32.xlu0 %v830_v62  ;;  %828 = vmax.xlane.f32.xlu1 %v827_v63 }
 0x2e0   :  { %v811_v0 = vpop.xlane.xlu0 %810 }
 0x2e1   :  { %v833_v1 = vsub.f32 %v265_v40, %v811_v0 }
 0x2e3   :  { %v841_v2 = vmul.f32 1.442695, %v833_v1 }
 0x2e4   :  { %v814_v3 = vpop.xlane.xlu1 %813 }
 0x2e5   :  { %1811 = vpow2.f32 %v841_v2  ;;  %v834_v4 = vsub.f32 %v342_v43, %v814_v3 }
 0x2e7   :  { %v843_v5 = vmul.f32 1.442695, %v834_v4 }
 0x2e8   :  { %v817_v6 = vpop.xlane.xlu0 %816 }
 0x2e9   :  { %1813 = vpow2.f32 %v843_v5  ;;  %v835_v7 = vsub.f32 %v419_v46, %v817_v6 }
 0x2eb   :  { %v845_v8 = vmul.f32 1.442695, %v835_v7 }
 0x2ec   :  { %v820_v9 = vpop.xlane.xlu0 %819 }
 0x2ed   :  { %1815 = vpow2.f32 %v845_v8  ;;  %v836_v10 = vsub.f32 %v496_v49, %v820_v9 }
 0x2ef   :  { %v1812_v11 = vpop.eup %1811  ;;  %v847_v12 = vmul.f32 1.442695, %v836_v10 }
 0x2f0   :  { %v826_v13 = vpop.xlane.xlu0 %825  ;;  %v857_v15 = vsel %vm808_vm2, %v1812_v11, 0.0  ;;  %v823_v39 = vpop.xlane.xlu1 %822 }
 0x2f1   :  { %1817 = vpow2.f32 %v847_v12  ;;  %v838_v16 = vsub.f32 %v650_v50, %v826_v13  ;;  %858 = vadd.xlane.f32.xlu1 %v857_v15  ;;  %v837_v40 = vsub.f32 %v2061_v54, %v823_v39 }
 0x2f3   :  { %v1814_v17 = vpop.eup %1813  ;;  %v851_v19 = vmul.f32 1.442695, %v838_v16  ;;  %v849_v42 = vmul.f32 1.442695, %v837_v40 }
 0x2f4   :  { %v832_v20 = vpop.xlane.xlu0 %831  ;;  %v860_v24 = vsel %vm808_vm2, %v1814_v17, 0.0  ;;  %v829_v41 = vpop.xlane.xlu1 %828 }
 0x2f5   :  { %v840_v25 = vsub.f32 %v804_v55, %v832_v20  ;;  %861 = vadd.xlane.f32.xlu0 %v860_v24  ;;  %1819 = vpow2.f32 %v851_v19  ;;  %v839_v43 = vsub.f32 %v727_v60, %v829_v41 }
 0x2f7   :  { %v1816_v28 = vpop.eup %1815  ;;  %v855_v29 = vmul.f32 1.442695, %v840_v25  ;;  %v853_v44 = vmul.f32 1.442695, %v839_v43 }
 0x2f8   :  { %v863_v32 = vsel %vm808_vm2, %v1816_v28, 0.0 }
 0x2f9   :  { %864 = vadd.xlane.f32.xlu1 %v863_v32  ;;  %1821 = vpow2.f32 %v855_v29 }
 0x2fa   :  { %1823 = vpow2.f32 %v849_v42 }
 0x2fb   :  { %v2071_v33 = vpop.eup %1817  ;;  %1825 = vpow2.f32 %v853_v44 }
 0x2fc   :  { %v866_v34 = vsel %vm808_vm2, %v2071_v33, 0.0 }
 0x2fd   :  { %867 = vadd.xlane.f32.xlu0 %v866_v34 }
 0x2ff   :  { %v2075_v35 = vpop.eup %1819 }
 0x300   :  { %v872_v36 = vsel %vm808_vm2, %v2075_v35, 0.0 }
 0x301   :  { %873 = vadd.xlane.f32.xlu0 %v872_v36 }
 0x303   :  { %v2079_v37 = vpop.eup %1821 }
 0x304   :  { %v878_v38 = vsel %vm808_vm2, %v2079_v37, 0.0  ;;  %v2089_v45 = vpop.eup %1823 }
 0x305   :  { %879 = vadd.xlane.f32.xlu0 %v878_v38 }
 0x30a   :  { %962 = vrot.lane.b32.xlu1 %v1985_v18, %s1922_s2  ;;  %v869_v18 = vsel %vm808_vm2, %v2089_v45, 0.0 }
 0x30e   :  { %1114 = vrot.lane.b32.xlu1 %v1990_v22, %s1922_s2  ;;  %v2093_v22 = vpop.eup %1825 }
 0x31b   :  { %1038 = vrot.lane.b32.xlu0 %v1988_v21, %s1922_s2  ;;  %v875_v21 = vsel %vm808_vm2, %v2093_v22, 0.0 }
 0x31f   :  { %1266 = vrot.lane.b32.xlu0 %v1996_v26, %s1922_s2 }
 0x323   :  { %1418 = vrot.lane.b32.xlu0 %v2002_v30, %s1922_s2 }
 0x332   :  { %870 = vadd.xlane.f32.xlu1 %v869_v18 }
 0x336   :  { %876 = vadd.xlane.f32.xlu1 %v875_v21 }
 0x347   :  { %1190 = vrot.lane.b32.xlu1 %v1992_v23, %s1922_s2 }
 0x34b   :  { %1342 = vrot.lane.b32.xlu1 %v1999_v27, %s1922_s2 }
 0x34f   :  { %1494 = vrot.lane.b32.xlu1 %v2005_v31, %s1922_s2 }
 0x37e   :  { %v859_v26 = vpop.xlane.xlu1 %858 }
 0x37f   :  { %1827 = vrcp.f32 %v859_v26 }
 0x382   :  { %v862_v30 = vpop.xlane.xlu0 %861 }
 0x383   :  { %1829 = vrcp.f32 %v862_v30 }
 0x386   :  { %v865_v46 = vpop.xlane.xlu1 %864 }
 0x387   :  { %1831 = vrcp.f32 %v865_v46 }
 0x389   :  { %v1828_v47 = vpop.eup %1827 }
 0x38a   :  { %v889_v48 = vmul.f32 %v1828_v47, %v1812_v11  ;;  %v963_v49 = vpop.permute.xlu1 %962  ;;  %v868_v50 = vpop.xlane.xlu0 %867 }
 0x38b   :  { %1755 = vmatpush3.msra.mxu1 %v963_v49  ;;  %1833 = vrcp.f32 %v868_v50 }
 0x38c   :  { %v897_v51 = vsel %vm808_vm2, %v889_v48, 0.0  ;;  %1764 = vmatprep.subr.mxu1 %v1919_v14 }
 0x38d   :  { %v1830_v23 = vpop.eup %1829  ;;  %v898_v52 = vrot.slane %v897_v51, 4 }
 0x38e   :  { %v890_v27 = vmul.f32 %v1830_v23, %v1814_v17  ;;  %v874_v31 = vpop.xlane.xlu0 %873  ;;  %v1115_v9 = vpop.permute.xlu1 %1114 }
 0x38f   :  { %v899_v53 = vadd.f32 %v898_v52, %v897_v51  ;;  %1835 = vrcp.f32 %v874_v31 }
 0x390   :  { %v904_v54 = vsel %vm808_vm2, %v890_v27, 0.0 }
 0x391   :  { %v1832_v55 = vpop.eup %1831  ;;  %v905_v56 = vrot.slane %v904_v54, 4  ;;  %v900_v57 = vrot.slane %v899_v53, 2 }
 0x392   :  { %v891_v58 = vmul.f32 %v1832_v55, %v1816_v28  ;;  %v880_v60 = vpop.xlane.xlu0 %879 }
 0x393   :  { %v906_v59 = vadd.f32 %v905_v56, %v904_v54  ;;  %v901_v61 = vadd.f32 %v900_v57, %v899_v53  ;;  %1837 = vrcp.f32 %v880_v60 }
 0x394   :  { %v911_v62 = vsel %vm808_vm2, %v891_v58, 0.0 }
 0x395   :  { %v912_v63 = vrot.slane %v911_v62, 4  ;;  %v902_v0 = vrot.slane %v901_v61, 1  ;;  %v907_v1 = vrot.slane %v906_v59, 2  ;;  %v1834_v19 = vpop.eup %1833 }
 0x396   :  { %v1039_v3 = vpop.permute.xlu0 %1038  ;;  %v892_v20 = vmul.f32 %v1834_v19, %v2071_v33 }
 0x397   :  { %v913_v2 = vadd.f32 %v912_v63, %v911_v62  ;;  %v903_v4 = vadd.f32 %v902_v0, %v901_v61  ;;  %v908_v5 = vadd.f32 %v907_v1, %v906_v59  ;;  %1760 = vmatpush3.msra.mxu0 %v1039_v3 }
 0x398   :  { %1769 = vmatprep.subr.mxu0 %v1919_v14  ;;  %v918_v25 = vsel %vm808_vm2, %v892_v20, 0.0 }
 0x399   :  { %v954_v6 = vmul.f32 0.125, %v903_v4  ;;  %v909_v7 = vrot.slane %v908_v5, 1  ;;  %v914_v8 = vrot.slane %v913_v2, 2  ;;  %v1836_v24 = vpop.eup %1835  ;;  %v919_v32 = vrot.slane %v918_v25, 4 }
 0x39a   :  { %v1267_v17 = vpop.permute.xlu0 %1266  ;;  %v894_v28 = vmul.f32 %v1836_v24, %v2075_v35 }
 0x39b   :  { %1757 = vmatmul.mubr.msk.f32.vlgmr.msra.gmra.mrb[12].mxu1 %vm808_vm2, %v954_v6  ;;  %v910_v10 = vadd.f32 %v909_v7, %v908_v5  ;;  %v915_v11 = vadd.f32 %v914_v8, %v913_v2  ;;  %v920_v38 = vadd.f32 %v919_v32, %v918_v25 }
 0x39c   :  { %1765 = vmatpush3.msra.mxu1 %v1115_v9  ;;  %1766 = vmatprep.mubr.msk.f32.mxu1 %vm1920_vm1, %v1919_v14  ;;  %v932_v34 = vsel %vm808_vm2, %v894_v28, 0.0 }
 0x39d   :  { %v955_v12 = vmul.f32 0.125, %v910_v10  ;;  %1774 = vmatprep.subr.mxu1 %v1919_v14  ;;  %v916_v13 = vrot.slane %v915_v11, 1  ;;  %v1838_v29 = vpop.eup %1837  ;;  %v933_v39 = vrot.slane %v932_v34, 4  ;;  %v921_v43 = vrot.slane %v920_v38, 2 }
 0x39e   :  { %v896_v36 = vmul.f32 %v1838_v29, %v2079_v37  ;;  %v1419_v8 = vpop.permute.xlu0 %1418 }
 0x39f   :  { %1762 = vmatmul.mubr.msk.f32.vlgmr.msra.gmra.mrb[12].mxu0 %vm808_vm2, %v955_v12  ;;  %v917_v15 = vadd.f32 %v916_v13, %v915_v11  ;;  %v934_v41 = vadd.f32 %v933_v39, %v932_v34  ;;  %v922_v33 = vadd.f32 %v921_v43, %v920_v38 }
 0x3a0   :  { %1771 = vmatprep.mubr.msk.f32.mxu0 %vm1920_vm1, %v1919_v14  ;;  %v946_v40 = vsel %vm808_vm2, %v896_v36, 0.0 }
 0x3a1   :  { %v956_v16 = vmul.f32 0.125, %v917_v15  ;;  %v947_v42 = vrot.slane %v946_v40, 4  ;;  %v935_v18 = vrot.slane %v934_v41, 2  ;;  %v923_v26 = vrot.slane %v922_v33, 1 }
 0x3a3   :  { %1767 = vmatmul.mubr.msk.f32.vlgmr.msra.gmra.mrb[14].mxu1 %vm808_vm2, %v956_v16  ;;  %v948_v44 = vadd.f32 %v947_v42, %v946_v40  ;;  %v936_v30 = vadd.f32 %v935_v18, %v934_v41  ;;  %v924_v47 = vadd.f32 %v923_v26, %v922_v33 }
 0x3a4   :  { %1775 = vmatpush3.msra.mxu1 %v1267_v17  ;;  %1776 = vmatprep.mubr.msk.f32.mxu1 %vm1920_vm1, %v1919_v14 }
 0x3a5   :  { %1784 = vmatprep.subr.mxu1 %v1919_v14  ;;  %v949_v35 = vrot.slane %v948_v44, 2  ;;  %v937_v48 = vrot.slane %v936_v30, 1  ;;  %v957_v50 = vmul.f32 0.125, %v924_v47 }
 0x3a7   :  { %v950_v49 = vadd.f32 %v949_v35, %v948_v44  ;;  %v938_v51 = vadd.f32 %v937_v48, %v936_v30 }
 0x3a9   :  { %v951_v23 = vrot.slane %v950_v49, 1  ;;  %v959_v31 = vmul.f32 0.125, %v938_v51 }
 0x3ab   :  { %v952_v54 = vadd.f32 %v951_v23, %v950_v49 }
 0x3ad   :  { %v961_v60 = vmul.f32 0.125, %v952_v54 }
 0x3bf   :  { %v871_v21 = vpop.xlane.xlu1 %870 }
 0x3c0   :  { %1839 = vrcp.f32 %v871_v21 }
 0x3c3   :  { %v877_v46 = vpop.xlane.xlu1 %876 }
 0x3c4   :  { %1841 = vrcp.f32 %v877_v46 }
 0x3c7   :  { %v1191_v37 = vpop.permute.xlu1 %1190 }
 0x3c8   :  { %1770 = vmatpush3.msra.mxu0 %v1191_v37 }
 0x3c9   :  { %1772 = vmatmul.mubr.msk.f32.vlgmr.msra.gmra.mrb[14].mxu0 %vm808_vm2, %v957_v50  ;;  %1779 = vmatprep.subr.mxu0 %v1919_v14 }
 0x3ca   :  { %v1840_v52 = vpop.eup %1839  ;;  %1781 = vmatprep.mubr.msk.f32.mxu0 %vm1920_vm1, %v1919_v14 }
 0x3cb   :  { %v893_v27 = vmul.f32 %v1840_v52, %v2089_v45  ;;  %v1343_v53 = vpop.permute.xlu1 %1342 }
 0x3cc   :  { %1780 = vmatpush3.msra.mxu0 %v1343_v53 }
 0x3cd   :  { %v925_v55 = vsel %vm808_vm2, %v893_v27, 0.0  ;;  %1782 = vmatmul.mubr.msk.f32.vlgmr.msra.gmra.mrb[16].mxu0 %vm808_vm2, %v959_v31  ;;  %1789 = vmatprep.subr.mxu0 %v1919_v14 }
 0x3ce   :  { %v1842_v56 = vpop.eup %1841  ;;  %v926_v57 = vrot.slane %v925_v55, 4  ;;  %1791 = vmatprep.mubr.msk.f32.mxu0 %vm1920_vm1, %v1919_v14 }
 0x3cf   :  { %v895_v58 = vmul.f32 %v1842_v56, %v2093_v22  ;;  %v1495_v59 = vpop.permute.xlu1 %1494 }
 0x3d0   :  { %v927_v45 = vadd.f32 %v926_v57, %v925_v55  ;;  %1790 = vmatpush3.msra.mxu0 %v1495_v59 }
 0x3d1   :  { %v939_v61 = vsel %vm808_vm2, %v895_v58, 0.0  ;;  %1792 = vmatmul.mubr.msk.f32.vlgmr.msra.gmra.mrb[18].mxu0 %vm808_vm2, %v961_v60 }
 0x3d2   :  { %v940_v62 = vrot.slane %v939_v61, 4  ;;  %v928_v63 = vrot.slane %v927_v45, 2 }
 0x3d4   :  { %v941_v0 = vadd.f32 %v940_v62, %v939_v61  ;;  %v929_v1 = vadd.f32 %v928_v63, %v927_v45 }
 0x3d6   :  { %v930_v2 = vrot.slane %v929_v1, 1  ;;  %v942_v3 = vrot.slane %v941_v0, 2 }
 0x3d8   :  { %v931_v4 = vadd.f32 %v930_v2, %v929_v1  ;;  %v943_v5 = vadd.f32 %v942_v3, %v941_v0 }
 0x3da   :  { %v958_v6 = vmul.f32 0.125, %v931_v4  ;;  %v944_v7 = vrot.slane %v943_v5, 1 }
 0x3dc   :  { %1777 = vmatmul.mubr.msk.f32.vlgmr.msra.gmra.mrb[16].mxu1 %vm808_vm2, %v958_v6  ;;  %v945_v22 = vadd.f32 %v944_v7, %v943_v5 }
 0x3dd   :  { %1785 = vmatpush3.msra.mxu1 %v1419_v8  ;;  %1786 = vmatprep.mubr.msk.f32.mxu1 %vm1920_vm1, %v1919_v14 }
 0x3de   :  { %v960_v9 = vmul.f32 0.125, %v945_v22 }
 0x3e0   :  { %1787 = vmatmul.mubr.msk.f32.vlgmr.msra.gmra.mrb[18].mxu1 %vm808_vm2, %v960_v9 }
 0x46e   :  { %v1034_v10 = vpop.f32.mrb[12].mxu1 }
 0x46f   :  { %v1758_v11 = vpop.f32.mrb[13].mxu1 }
 0x472   :  { %v1110_v12 = vpop.f32.mrb[12].mxu0 }
 0x473   :  { %v1578_v13 = vrot.slane %v1110_v12, 7  ;;  %v1763_v15 = vpop.f32.mrb[13].mxu0 }
 0x475   :  { %v1580_v16 = vsel %vm1579_vm3, %v1578_v13, %v1034_v10 }
 0x476   :  { %v1186_v17 = vpop.f32.mrb[14].mxu1 }
 0x477   :  { %v1581_v19 = vrot.slane %v1186_v17, 6  ;;  %v1768_v20 = vpop.f32.mrb[15].mxu1 }
 0x479   :  { %v1583_v24 = vsel %vm1582_vm4, %v1581_v19, %v1580_v16 }
 0x49c   :  { %v1262_v25 = vpop.f32.mrb[14].mxu0 }
 0x49d   :  { %v1584_v28 = vrot.slane %v1262_v25, 5  ;;  %v1773_v29 = vpop.f32.mrb[15].mxu0 }
 0x49f   :  { %v1586_v14 = vsel %vm1585_vm5, %v1584_v28, %v1583_v24 }
 0x4a0   :  { %v1414_v32 = vpop.f32.mrb[16].mxu0 }
 0x4a1   :  { %v1783_v34 = vpop.f32.mrb[17].mxu0  ;;  %v1590_v42 = vrot.slane %v1414_v32, 3 }
 0x4a4   :  { %v1566_v36 = vpop.f32.mrb[18].mxu0 }
 0x4a5   :  { %v1793_v38 = vpop.f32.mrb[19].mxu0  ;;  %v1596_v26 = vrot.slane %v1566_v36, 1 }
 0x4af   :  { %v1338_v39 = vpop.f32.mrb[16].mxu1 }
 0x4b0   :  { %v1587_v40 = vrot.slane %v1338_v39, 4  ;;  %v1778_v41 = vpop.f32.mrb[17].mxu1 }
 0x4b2   :  { %v1589_v43 = vsel %vm1588_vm6, %v1587_v40, %v1586_v14 }
 0x4b3   :  { %v1490_v44 = vpop.f32.mrb[18].mxu1  ;;  %v1592_v33 = vsel %vm1591_vm7, %v1590_v42, %v1589_v43 }
 0x4b4   :  { %v1593_v18 = vrot.slane %v1490_v44, 2  ;;  %v1788_v21 = vpop.f32.mrb[19].mxu1 }
 0x4b6   :  { %v1595_v30 = vsel %vm1594_vm8, %v1593_v18, %v1592_v33 }
 0x4b7   :  { %v1598_v35 = vsel %vm1597_vm9, %v1596_v26, %v1595_v30 }
 0x4b8   :  { %1600 = vst.msk [vmem:[#allocation7] sm:$0xff] %vm62_vm0, %v1598_v35 }
 0x4b9   :  { %1898 = shalt.err (!%p1895_p6)
}
 0x4ba   :  { %s1899_s17 = scalar_lea.hbm %s2155_s3, 128 }
 0x4bb   :  { %p1900_p7 = scmp.ne.s32.totalorder %s2155_s3, %s1899_s17  ;;  %p1903_p8 = scmp.lt.u32.totalorder %s1899_s17, %s2155_s3 }
 0x4bd   :  { %p1905_p9 = pnand %p1903_p8, %p1900_p7 }
 0x4bf   :  { %1908 = shalt.err (!%p1905_p9)
}
 0x4c0   :  { %1610 = dma.vmem_to_hbm [thread:$0]  %s1608_s13, 128, %s2155_s3, [#allocation4]  }
 0x4c1   :  { %1913 = dma.done.wait [#allocation4], 128  }
 0x4c2   :  { %1914 = vsyncadd [#allocation4], 4294967168 }
 0x4c3   :  { %1614 = vsyncpa [#allocation3], 1 }
 0x4c4   :  { %1615 = vsyncpa [#allocation6], 1 }
 0x4c5   :  { %1616 = vsyncpa [#allocation4], 1 }

</bundles_post_ra>
